<compile_context>
chip_gen: v7x
topology: tpu7x:2x2x1
jax: 0.10.0
libtpu: 0.0.40
codegen_flags: <defaults>
</compile_context>

<pallas_src>
import functools

import jax
import jax.numpy as jnp
from jax.experimental import pallas as pl
from jax.experimental.pallas import tpu as pltpu

_LANES = 128
_TARGET_BLOCK_BYTES = 1 << 20      # ~1 MiB streamed blocks: ~85% HBM roofline, fits all gens
_FUSED_MAX_ELEMS = 256 * 1024      # <= 1 MiB f32 weight -> single fused VMEM-resident kernel


# ----------------------------- fused single-kernel path -----------------------------

def _make_fused_kernel(levels: float, n_valid: int):
    """Whole weight resident in VMEM: stats + quantize in one kernel body."""
    nf = float(n_valid)

    def kernel(alpha_ref, w_ref, o_ref):
        alpha = alpha_ref[0]
        w = w_ref[...].astype(jnp.float32)
        # Zero padding (if any) contributes 0 to both sums; nf is the true element count.
        s = jnp.sum(w, keepdims=True)              # (1, 1)
        ss = jnp.sum(w * w, keepdims=True)         # (1, 1)
        mean = s / nf
        var = (ss - nf * mean * mean) / (nf - 1.0)  # torch .std(): unbiased (ddof=1)
        inv = levels / (jnp.sqrt(var) * alpha)      # levels / (std * alpha)
        x = jnp.clip((w - mean) * inv, -levels, levels)
        # round() is odd-symmetric, so the sign/abs of the torch code folds away.
        o_ref[...] = (jnp.round(x) * (alpha / levels)).astype(o_ref.dtype)

    return kernel


# ----------------------------- two-pass streaming path ------------------------------

def _make_reduce_kernel(tile_rows: int, rows_valid: int, needs_mask: bool):
    """Streaming sum / sum-of-squares into f32 lane partials; scalars written once at end."""

    def kernel(w_ref, stats_ref, acc_s_ref, acc_ss_ref):
        i = pl.program_id(0)

        @pl.when(i == 0)
        def _():
            acc_s_ref[...] = jnp.zeros_like(acc_s_ref)
            acc_ss_ref[...] = jnp.zeros_like(acc_ss_ref)

        w = w_ref[...].astype(jnp.float32)
        if needs_mask:  # static: only emitted when the last grid block is partial
            row = jax.lax.broadcasted_iota(jnp.int32, w.shape, 0) + i * tile_rows
            w = jnp.where(row < rows_valid, w, 0.0)

        acc_s_ref[...] += jnp.sum(w, axis=0, keepdims=True)        # (1, LANES) lane partials
        acc_ss_ref[...] += jnp.sum(w * w, axis=0, keepdims=True)

        @pl.when(i == pl.num_programs(0) - 1)
        def _():
            stats_ref[0] = jnp.sum(acc_s_ref[...])
            stats_ref[1] = jnp.sum(acc_ss_ref[...])

    return kernel


def _make_quant_kernel(levels: float, n_valid: int):
    """Elementwise quantize; scalar epilogue (mean/std/scale) folded in (negligible/step)."""
    nf = float(n_valid)

    def kernel(stats_ref, alpha_ref, w_ref, o_ref):
        alpha = alpha_ref[0]
        mean = stats_ref[0] / nf
        var = (stats_ref[1] - nf * mean * mean) / (nf - 1.0)
        std = jnp.sqrt(jnp.reshape(var, (1, 1)))
        inv = levels / (std * alpha)
        w = w_ref[...].astype(jnp.float32)
        x = jnp.clip((w - mean) * inv, -levels, levels)
        o_ref[...] = (jnp.round(x) * (alpha / levels)).astype(o_ref.dtype)

    return kernel


# ------------------------------------ wrapper ----------------------------------------

@functools.partial(jax.jit, static_argnames=("w_bit",))
def weight_quantize_fn_pallas(weight: jax.Array, wgt_alpha: jax.Array, w_bit: int) -> jax.Array:
    """Pallas TPU forward of weight_quantize_fn.

    weight   : conv weight (any shape; op is a global reduction + elementwise map)
    wgt_alpha: scalar parameter (learnable in the torch module; init = 3.0)
    w_bit    : total weight bits; effective quant bits b = w_bit - 1
    """
    levels = float(2 ** (w_bit - 1) - 1)
    orig_shape = weight.shape
    dtype = weight.dtype
    itemsize = jnp.dtype(dtype).itemsize
    n = int(weight.size)

    alpha_arr = jnp.asarray(wgt_alpha, jnp.float32).reshape(1)

    # Lane-dense (rows, 128) view. Free reshape when aligned; tiny pad only when ragged.
    rows = pl.cdiv(n, _LANES)
    aligned = (rows * _LANES == n)
    if aligned:
        w2d = weight.reshape(rows, _LANES)
    else:
        # TODO(synk): for *large* ragged weights, mask the tail in-kernel instead of padding.
        w2d = jnp.pad(weight.reshape(-1), (0, rows * _LANES - n)).reshape(rows, _LANES)

    if n <= _FUSED_MAX_ELEMS:
        # ---- fused path: one kernel, one HBM read + one write ----
        out2d = pl.pallas_call(
            _make_fused_kernel(levels, n),
            out_shape=jax.ShapeDtypeStruct((rows, _LANES), dtype),
            grid_spec=pltpu.PrefetchScalarGridSpec(
                num_scalar_prefetch=0,
                grid=(1,),
                in_specs=[pl.BlockSpec(memory_space=pltpu.SMEM),           # alpha
                          pl.BlockSpec((rows, _LANES), lambda i: (0, 0))],
                out_specs=pl.BlockSpec((rows, _LANES), lambda i: (0, 0)),
            ),
        )(alpha_arr, w2d)
    else:
        # ---- streaming two-pass path with ~1 MiB blocks ----
        sublane = 8 * max(1, 4 // itemsize)          # 8 (f32), 16 (bf16/f16), 32 (int8)
        target_rows = max(sublane, _TARGET_BLOCK_BYTES // (_LANES * itemsize))
        tile_rows = min(target_rows, (rows // sublane) * sublane)
        num_tiles = pl.cdiv(rows, tile_rows)
        needs_mask = (rows % tile_rows) != 0

        stats = pl.pallas_call(
            _make_reduce_kernel(tile_rows, rows, needs_mask),
            out_shape=jax.ShapeDtypeStruct((2,), jnp.float32),
            grid_spec=pltpu.PrefetchScalarGridSpec(
                num_scalar_prefetch=0,
                grid=(num_tiles,),
                in_specs=[pl.BlockSpec((tile_rows, _LANES), lambda i: (i, 0))],
                out_specs=pl.BlockSpec(memory_space=pltpu.SMEM),
                scratch_shapes=[pltpu.VMEM((1, _LANES), jnp.float32),
                                pltpu.VMEM((1, _LANES), jnp.float32)],
            ),
            compiler_params=pltpu.CompilerParams(dimension_semantics=("arbitrary",)),
        )(w2d)

        out2d = pl.pallas_call(
            _make_quant_kernel(levels, n),
            out_shape=jax.ShapeDtypeStruct((rows, _LANES), dtype),
            grid_spec=pltpu.PrefetchScalarGridSpec(
                num_scalar_prefetch=0,
                grid=(num_tiles,),
                in_specs=[pl.BlockSpec(memory_space=pltpu.SMEM),            # [sum, sumsq]
                          pl.BlockSpec(memory_space=pltpu.SMEM),            # alpha
                          pl.BlockSpec((tile_rows, _LANES), lambda i: (i, 0))],
                out_specs=pl.BlockSpec((tile_rows, _LANES), lambda i: (i, 0)),
            ),
            compiler_params=pltpu.CompilerParams(dimension_semantics=("parallel",)),
        )(stats, alpha_arr, w2d)

    if aligned:
        return out2d.reshape(orig_shape)
    return out2d.reshape(-1)[:n].reshape(orig_shape)


# ------------------------------------ reference / test --------------------------------

def _reference(weight, wgt_alpha, w_bit):
    """Pure-JAX reference matching the PyTorch module."""
    levels = 2.0 ** (w_bit - 1) - 1.0
    mean = jnp.mean(weight)
    std = jnp.std(weight, ddof=1)
    w_n = (weight - mean) / std
    x = jnp.clip(w_n / wgt_alpha, -1.0, 1.0)
    return jnp.round(jnp.abs(x) * levels) / levels * jnp.sign(x) * wgt_alpha


def _quant_close(out, ref, qstep):
    """Allow a vanishing fraction of single-level flips from f32 accumulation-order diffs."""
    d = jnp.abs(out.astype(jnp.float32) - ref)
    max_ok = bool(jnp.max(d) <= qstep + 1e-4)
    frac_bad = float(jnp.mean((d > 1e-4).astype(jnp.float32)))
    return max_ok and frac_bad < 1e-3


if __name__ == "__main__":
    key = jax.random.PRNGKey(0)
    k1, k2 = jax.random.split(key)

    w_bit = 4                          # effective quant bits = 3
    wgt_alpha = jnp.float32(3.0)       # deterministic parameter init, as in the module
    qstep = 3.0 / (2.0 ** (w_bit - 1) - 1.0)

    # Case 1: typical small conv weight (OIHW), ragged numel -> fused single-kernel path.
    w_small = jax.random.normal(k1, (4, 4, 3, 3), dtype=jnp.float32)
    out_small = weight_quantize_fn_pallas(w_small, wgt_alpha, w_bit=w_bit)
    jax.block_until_ready(out_small)
    ref_small = _reference(w_small, wgt_alpha, w_bit)
    assert out_small.shape == w_small.shape and out_small.dtype == w_small.dtype
    assert _quant_close(out_small, ref_small, qstep)

    # Case 2: larger, 128-aligned weight -> two-pass streaming path (partial last tile masked).
    w_big = jax.random.normal(k2, (72, 64, 8, 8), dtype=jnp.float32)   # 294912 elems
    out_big = weight_quantize_fn_pallas(w_big, wgt_alpha, w_bit=w_bit)
    jax.block_until_ready(out_big)
    ref_big = _reference(w_big, wgt_alpha, w_bit)
    assert out_big.shape == w_big.shape and out_big.dtype == w_big.dtype
    assert _quant_close(out_big, ref_big, qstep)

    print("KERNEL_OK")
</pallas_src>

<mosaic_0001>
module attributes {stable_mosaic.version = 11 : i64} {
  func.func @kernel(%arg0: i32, %arg1: memref<1xf32, #tpu.memory_space<smem>>, %arg2: memref<2x128xf32, #tpu.memory_space<vmem>>, %arg3: memref<2x128xf32, #tpu.memory_space<vmem>>) attributes {dimension_semantics = [#tpu.dimension_semantics<arbitrary>], iteration_bounds = array<i64: 1>, scalar_prefetch = 0 : i64, scratch_operands = 0 : i64, tpu.core_type = #tpu.core_type<tc>, window_params = [{transform_indices = @transform_0, window_bounds = array<i64: 1>}, {pipeline_mode = #tpu.pipeline_mode<synchronous>, transform_indices = @transform_1, window_bounds = array<i64: 2, 128>}, {pipeline_mode = #tpu.pipeline_mode<synchronous>, transform_indices = @transform_2, window_bounds = array<i64: 2, 128>}]} {
    %c0 = arith.constant 0 : index
    %0 = memref.load %arg1[%c0] : memref<1xf32, #tpu.memory_space<smem>>
    %c0_0 = arith.constant 0 : index
    %c0_1 = arith.constant 0 : index
    %1 = vector.load %arg2[%c0_0, %c0_1] : memref<2x128xf32, #tpu.memory_space<vmem>>, vector<2x128xf32>
    %2 = vector.shape_cast %1 : vector<2x128xf32> to vector<1x2x128xf32>
    %cst = arith.constant dense<0.000000e+00> : vector<1xf32>
    %3 = vector.multi_reduction <add>, %2, %cst [1, 2] : vector<1x2x128xf32> to vector<1xf32>
    %4 = vector.shape_cast %3 : vector<1xf32> to vector<1x1x1xf32>
    %5 = vector.extract %4[0, 0, 0] : f32 from vector<1x1x1xf32>
    %6 = vector.broadcast %5 : f32 to vector<1x1xf32>
    %7 = arith.mulf %1, %1 : vector<2x128xf32>
    %8 = vector.shape_cast %7 : vector<2x128xf32> to vector<1x2x128xf32>
    %cst_2 = arith.constant dense<0.000000e+00> : vector<1xf32>
    %9 = vector.multi_reduction <add>, %8, %cst_2 [1, 2] : vector<1x2x128xf32> to vector<1xf32>
    %10 = vector.shape_cast %9 : vector<1xf32> to vector<1x1x1xf32>
    %11 = vector.extract %10[0, 0, 0] : f32 from vector<1x1x1xf32>
    %12 = vector.broadcast %11 : f32 to vector<1x1xf32>
    %cst_3 = arith.constant 1.440000e+02 : f32
    %13 = vector.broadcast %cst_3 : f32 to vector<1x1xf32>
    %14 = arith.divf %6, %13 : vector<1x1xf32>
    %cst_4 = arith.constant 1.440000e+02 : f32
    %15 = vector.broadcast %cst_4 : f32 to vector<1x1xf32>
    %16 = arith.mulf %15, %14 : vector<1x1xf32>
    %17 = arith.mulf %16, %14 : vector<1x1xf32>
    %18 = arith.subf %12, %17 : vector<1x1xf32>
    %cst_5 = arith.constant 1.430000e+02 : f32
    %19 = vector.broadcast %cst_5 : f32 to vector<1x1xf32>
    %20 = arith.divf %18, %19 : vector<1x1xf32>
    %21 = math.sqrt %20 : vector<1x1xf32>
    %22 = vector.broadcast %0 : f32 to vector<1x1xf32>
    %23 = arith.mulf %21, %22 : vector<1x1xf32>
    %cst_6 = arith.constant 7.000000e+00 : f32
    %24 = vector.broadcast %cst_6 : f32 to vector<1x1xf32>
    %25 = arith.divf %24, %23 : vector<1x1xf32>
    %26 = vector.broadcast %14 : vector<1x1xf32> to vector<2x128xf32>
    %27 = arith.subf %1, %26 : vector<2x128xf32>
    %28 = vector.broadcast %25 : vector<1x1xf32> to vector<2x128xf32>
    %29 = arith.mulf %27, %28 : vector<2x128xf32>
    %cst_7 = arith.constant -7.000000e+00 : f32
    %cst_8 = arith.constant 7.000000e+00 : f32
    %30 = vector.broadcast %cst_7 : f32 to vector<2x128xf32>
    %31 = arith.maximumf %30, %29 : vector<2x128xf32>
    %32 = vector.broadcast %cst_8 : f32 to vector<2x128xf32>
    %33 = arith.minimumf %32, %31 : vector<2x128xf32>
    %34 = math.roundeven %33 : vector<2x128xf32>
    %cst_9 = arith.constant 7.000000e+00 : f32
    %35 = arith.divf %0, %cst_9 : f32
    %36 = vector.broadcast %35 : f32 to vector<2x128xf32>
    %37 = arith.mulf %34, %36 : vector<2x128xf32>
    %c0_10 = arith.constant 0 : index
    %c0_11 = arith.constant 0 : index
    %38 = vector.load %arg3[%c0_10, %c0_11] : memref<2x128xf32, #tpu.memory_space<vmem>>, vector<2x128xf32>
    tpu.vector_store %arg3[%c0_10, %c0_11], %37 {strides = array<i32>} : memref<2x128xf32, #tpu.memory_space<vmem>>, vector<2x128xf32>,
    return
  }
  func.func @transform_0(%arg0: i32) -> i32 {
    %c0_i32 = arith.constant 0 : i32
    %c0_i32_0 = arith.constant 0 : i32
    return %c0_i32 : i32
  }
  func.func @transform_1(%arg0: i32) -> (i32, i32) {
    %c0_i32 = arith.constant 0 : i32
    %c0_i32_0 = arith.constant 0 : i32
    %c0_i32_1 = arith.constant 0 : i32
    return %c0_i32, %c0_i32_0 : i32, i32
  }
  func.func @transform_2(%arg0: i32) -> (i32, i32) {
    %c0_i32 = arith.constant 0 : i32
    %c0_i32_0 = arith.constant 0 : i32
    %c0_i32_1 = arith.constant 0 : i32
    return %c0_i32, %c0_i32_0 : i32, i32
  }
}

</mosaic_0001>

<bundles_post_ra>
// kernel: weight_quantize_fn_pallas.1
= control target key start
LH: loop header
LB: loop body
LE: loop exit
PB: predicated region body
PF: predicated region fallthrough
CT: control target
= control target key end

     0   :  { %vm14_vm0 = vcmask 1041408   ;;  %s108_s1 = inlined_call_operand.vmem [shape: f32[2,128], index: 1, kind: input, shape index: {}]   ;;  %s109_s0 = inlined_call_operand.<no memory space> [shape: f32[1], index: 0, kind: input, shape index: {}]   ;;  %s110_s2 = inlined_call_operand.vmem [shape: f32[2,128], index: 2, kind: output, shape index: {}]  }
   0x1   :  { %v13_v0 = vld [vmem:[%s108_s1] sm:$0x3]  ;;  %v52_v28 = vstv %s109_s0  ;;  %s63_s16 = smul.f32 0.14285715, %s109_s0 }
   0x2   :  { %v15_v1 = vsel %vm14_vm0, %v13_v0, 0.0  ;;  %v26_v2 = vmul.f32 %v13_v0, %v13_v0 }
   0x3   :  { %16 = vadd.xlane.f32.xlu0 %v15_v1  ;;  %v64_v37 = vstv %s63_s16 }
   0x4   :  { %v27_v3 = vsel %vm14_vm0, %v26_v2, 0.0 }
   0x7   :  { %28 = vadd.xlane.f32.xlu0 %v27_v3 }
  0x90   :  { %v17_v4 = vpop.xlane.xlu0 %16 }
  0x91   :  { %v18_v5 = vrot.slane %v17_v4, 4 }
  0x93   :  { %v19_v6 = vadd.f32 %v18_v5, %v17_v4 }
  0x94   :  { %v29_v7 = vpop.xlane.xlu0 %28 }
  0x95   :  { %v20_v8 = vrot.slane %v19_v6, 2  ;;  %v30_v9 = vrot.slane %v29_v7, 4 }
  0x97   :  { %v31_v10 = vadd.f32 %v30_v9, %v29_v7  ;;  %v21_v11 = vadd.f32 %v20_v8, %v19_v6 }
  0x99   :  { %v32_v12 = vrot.slane %v31_v10, 2  ;;  %v22_v13 = vrot.slane %v21_v11, 1 }
  0x9b   :  { %v33_v14 = vadd.f32 %v32_v12, %v31_v10  ;;  %v23_v15 = vadd.f32 %v22_v13, %v21_v11 }
  0x9d   :  { %72 = vpush %v23_v15  ;;  %v34_v16 = vrot.slane %v33_v14, 1 }
  0x9f   :  { %v35_v17 = vadd.f32 %v34_v16, %v33_v14 }
  0xa1   :  { %74 = vpush %v35_v17 }
  0xce   :  { %s73_s1 = spop %72 }
  0xcf   :  { %v25_v18 = vstv %s73_s1 }
  0xd0   :  { %v39_v19 = vmul.f32 0.0069444445, %v25_v18 }
  0xd2   :  { %s75_s11 = spop %74  ;;  %v40_v20 = vmul.f32 144.0, %v39_v19  ;;  %v56_v33 = vsub.f32 %v13_v0, %v39_v19 }
  0xd3   :  { %v37_v22 = vstv %s75_s11 }
  0xd4   :  { %v41_v21 = vmul.f32 %v40_v20, %v39_v19 }
  0xd6   :  { %v42_v23 = vsub.f32 %v37_v22, %v41_v21 }
  0xd8   :  { %v44_v24 = vmul.f32 0.006993007, %v42_v23 }
  0xda   :  { %77 = vrsqrt.f32 %v44_v24  ;;  %vm47_vm1 = vcmp.eq.f32.partialorder %v44_v24, inf  ;;  %v50_v27 = vand.u32 2147483648, %v44_v24  ;;  %vm49_vm2 = vcmp.eq.f32.partialorder %v44_v24, 0.0 }
  0xe4   :  { %v78_v25 = vpop.eup %77 }
  0xe5   :  { %v46_v26 = vmul.f32 %v78_v25, %v44_v24 }
  0xe7   :  { %v48_v29 = vsel %vm47_vm1, %v44_v24, %v46_v26 }
  0xe8   :  { %v51_v30 = vsel %vm49_vm2, %v50_v27, %v48_v29 }
  0xe9   :  { %v53_v31 = vmul.f32 %v52_v28, %v51_v30 }
  0xeb   :  { %79 = vrcp.f32 %v53_v31 }
  0xf5   :  { %v80_v32 = vpop.eup %79 }
  0xf6   :  { %v55_v34 = vmul.f32 7.0, %v80_v32 }
  0xf8   :  { %v57_v35 = vmul.f32 %v56_v33, %v55_v34 }
  0xfa   :  { %v71_v36 = vclamps-f32 %v57_v35, 7.0 }
  0xfc   :  { %v76_v38 = vround.rtne.f32 %v71_v36 }
  0xfe   :  { %v65_v39 = vmul.f32 %v76_v38, %v64_v37 }
 0x100   :  { %66 = vst [vmem:[%s110_s2] sm:$0x3] %v65_v39 }

</bundles_post_ra>
